<compile_context>
chip_gen: v7x
topology: tpu7x:2x2x1
jax: 0.10.0
libtpu: 0.0.40
codegen_flags: <defaults>
</compile_context>

<pallas_src>
import jax
import jax.numpy as jnp
from jax.experimental import pallas as pl
from jax.experimental.pallas import tpu as pltpu

IN_DIM, HID_DIM, OUT_DIM = 8, 6, 4
SAMPLES_PER_ROW = 32                    # 32 samples * 8 features = 256 lanes
X_LANES = SAMPLES_PER_ROW * IN_DIM      # 256
H_LANES = SAMPLES_PER_ROW * 8           # 256 (hidden zero-padded 6 -> 8)
O_LANES = SAMPLES_PER_ROW * OUT_DIM     # 128


def svdd_kernel(w1_ref, w2_ref, x_ref, o_ref):
    # w1_ref: (256, 256) f32 VMEM  -- block-diag of 32 copies of [fc1.W^T | 0]
    # w2_ref: (256, 128) f32 VMEM  -- block-diag of 32 copies of [fc2.W^T ; 0]
    # x_ref : (tile_g, 256) f32 VMEM -- 32 interleaved samples per row
    # o_ref : (tile_g, 128) f32 VMEM -- 32 interleaved outputs per row
    #
    # Two MXU matmuls + VPU ReLUs; MXU flops are ~97% structural zeros but the
    # kernel is HBM-bound, so this just keeps the VALU slot empty.
    # (If bit-exact f32 accumulation is required, add
    #  precision=jax.lax.Precision.HIGHEST to both dots.)
    h = jnp.maximum(
        jnp.dot(x_ref[...], w1_ref[...], preferred_element_type=jnp.float32), 0.0)
    o_ref[...] = jnp.maximum(
        jnp.dot(h, w2_ref[...], preferred_element_type=jnp.float32), 0.0)


def reference_forward(x, w1, w2):
    # Pure-JAX reference matching the PyTorch semantics (full-f32 matmuls).
    hp = jax.lax.Precision.HIGHEST
    h = jnp.maximum(jnp.dot(x, w1.T, precision=hp), 0.0)
    return jnp.maximum(jnp.dot(h, w2.T, precision=hp), 0.0)


def make_block_diag_weights(w1, w2):
    """Build the interleaved-layout weights. In production, build these once."""
    # Per-sample layer-1 block: (in=8, hidden_padded=8), last 2 columns zero.
    w1t = jnp.zeros((IN_DIM, 8), jnp.float32).at[:, :HID_DIM].set(
        w1.T.astype(jnp.float32))
    # Per-sample layer-2 block: (hidden_padded=8, out=4), last 2 rows zero.
    w2t = jnp.zeros((8, OUT_DIM), jnp.float32).at[:HID_DIM, :].set(
        w2.T.astype(jnp.float32))
    eye = jnp.eye(SAMPLES_PER_ROW, dtype=jnp.float32)
    w1_big = jnp.kron(eye, w1t)   # (256, 256)
    w2_big = jnp.kron(eye, w2t)   # (256, 128)
    return w1_big, w2_big


def svdd_forward(x, w1, w2, *, tile_b=131072, min_kernel_batch=256):
    """x: (B, 8) f32, w1: (6, 8), w2: (4, 6)  ->  (B, 4) f32."""
    B, in_dim = x.shape
    assert in_dim == IN_DIM and w1.shape == (HID_DIM, IN_DIM) \
        and w2.shape == (OUT_DIM, HID_DIM)

    # Tiny batches: pallas_call fixed overhead dwarfs the work; let XLA fuse it.
    if B < min_kernel_batch:
        return reference_forward(x, w1, w2)

    x = x.astype(jnp.float32)

    # Interleave granule: pad only to a multiple of 32 (and only if B is ragged)
    # so the (B, 8) -> (B/32, 256) reshape is a free, row-major view. Zero rows
    # map to zero outputs (bias-free + ReLU) and are sliced off at the end.
    b32 = pl.cdiv(B, SAMPLES_PER_ROW) * SAMPLES_PER_ROW
    if b32 != B:
        x = jnp.pad(x, ((0, b32 - B), (0, 0)))
    g = b32 // SAMPLES_PER_ROW
    x2 = x.reshape(g, X_LANES)                       # free reshape, no transpose

    # Tile sizing in g-rows (1 g-row = 32 samples). tile_g must be a multiple of
    # 8 (f32 sublane rule). Use >= 2 tiles whenever there is enough work so both
    # v7x TensorCores are fed; the last grid block may be partial instead of
    # padding the batch up to a tile multiple.
    g8 = pl.cdiv(g, 8)
    target_g = max(8, (int(tile_b) // SAMPLES_PER_ROW // 8) * 8)
    target_g = min(target_g, 6144)    # keep blocks comfortably inside v7x 64 MiB VMEM
    min_tiles = 2 if g8 >= 2 else 1
    num_tiles = min(max(min_tiles, pl.cdiv(g8 * 8, target_g)), g8)
    tile_g = pl.cdiv(g8, num_tiles) * 8
    grid = (pl.cdiv(g, tile_g),)

    w1_big, w2_big = make_block_diag_weights(w1, w2)

    # VMEM budget: double-buffered x/out blocks + resident weights + h temp.
    vmem_bytes = (2 * tile_g * (X_LANES + O_LANES) * 4
                  + 2 * (X_LANES * H_LANES + H_LANES * O_LANES) * 4
                  + tile_g * H_LANES * 4)
    vmem_limit = min(max(int(1.5 * vmem_bytes) + (2 << 20), 16 << 20), 48 << 20)

    out2 = pl.pallas_call(
        svdd_kernel,
        out_shape=jax.ShapeDtypeStruct((g, O_LANES), jnp.float32),
        grid=grid,
        in_specs=[
            # Block-diagonal weights: full arrays, constant block index -> stay
            # resident in VMEM across the batch grid.
            pl.BlockSpec((X_LANES, H_LANES), lambda i: (0, 0)),
            pl.BlockSpec((H_LANES, O_LANES), lambda i: (0, 0)),
            # x: lane-dense interleaved batch tile, pipelined over the grid.
            pl.BlockSpec((tile_g, X_LANES), lambda i: (i, 0)),
        ],
        out_specs=pl.BlockSpec((tile_g, O_LANES), lambda i: (i, 0)),
        compiler_params=pltpu.CompilerParams(
            dimension_semantics=("parallel",),
            vmem_limit_bytes=vmem_limit,
        ),
    )(w1_big, w2_big, x2)

    # Free reshape back to row-major (b32, 4); drop the (rare) interleave pad.
    out = out2.reshape(b32, OUT_DIM)
    if b32 != B:
        out = out[:B]
    return out


def init_params(key):
    # Deterministic Kaiming-uniform-like init matching SVDDNet's declared shapes.
    k1, k2 = jax.random.split(key)
    bound1 = 1.0 / jnp.sqrt(8.0)
    bound2 = 1.0 / jnp.sqrt(6.0)
    w1 = jax.random.uniform(k1, (HID_DIM, IN_DIM), jnp.float32, -bound1, bound1)
    w2 = jax.random.uniform(k2, (OUT_DIM, HID_DIM), jnp.float32, -bound2, bound2)
    return w1, w2


if __name__ == "__main__":
    key = jax.random.PRNGKey(0)
    kx1, kx2, kw = jax.random.split(key, 3)
    w1, w2 = init_params(kw)

    # Tolerance note: any layout/semantics bug gives O(1) errors; the loose
    # 1e-2 bound only covers the possibility of a bf16-multipass MXU f32 path
    # (typical observed error is ~1e-6).
    TOL = 1e-2

    # Case 1: batch a multiple of 32 (zero-copy input reshape) but not of the
    # tile size -> multi-step grid with a partial last block.
    B1 = 2080
    x1 = jax.random.normal(kx1, (B1, IN_DIM), jnp.float32)
    out1 = jax.block_until_ready(svdd_forward(x1, w1, w2, tile_b=1024))
    ref1 = reference_forward(x1, w1, w2)
    assert out1.shape == (B1, OUT_DIM)
    assert jnp.allclose(out1, ref1, atol=TOL, rtol=TOL), "mismatch vs reference (case 1)"

    # Case 2: ragged batch (not a multiple of 32) -> small interleave-pad path.
    B2 = 1234
    x2 = jax.random.normal(kx2, (B2, IN_DIM), jnp.float32)
    out2 = jax.block_until_ready(svdd_forward(x2, w1, w2, tile_b=1024))
    ref2 = reference_forward(x2, w1, w2)
    assert out2.shape == (B2, OUT_DIM)
    assert jnp.allclose(out2, ref2, atol=TOL, rtol=TOL), "mismatch vs reference (case 2)"

    print("KERNEL_OK")
</pallas_src>

<mosaic_0001>
module attributes {stable_mosaic.version = 11 : i64} {
  func.func @svdd_kernel(%arg0: i32, %arg1: memref<256x256xf32, #tpu.memory_space<vmem>>, %arg2: memref<256x128xf32, #tpu.memory_space<vmem>>, %arg3: memref<24x256xf32, #tpu.memory_space<vmem>>, %arg4: memref<24x128xf32, #tpu.memory_space<vmem>>) attributes {dimension_semantics = [#tpu.dimension_semantics<parallel>], iteration_bounds = array<i64: 3>, scalar_prefetch = 0 : i64, scratch_operands = 0 : i64, tpu.core_type = #tpu.core_type<tc>, window_params = [{pipeline_mode = #tpu.pipeline_mode<synchronous>, transform_indices = @transform_0, window_bounds = array<i64: 256, 256>}, {pipeline_mode = #tpu.pipeline_mode<synchronous>, transform_indices = @transform_1, window_bounds = array<i64: 256, 128>}, {transform_indices = @transform_2, window_bounds = array<i64: 24, 256>}, {transform_indices = @transform_3, window_bounds = array<i64: 24, 128>}]} {
    %c0 = arith.constant 0 : index
    %c0_0 = arith.constant 0 : index
    %0 = vector.load %arg3[%c0, %c0_0] : memref<24x256xf32, #tpu.memory_space<vmem>>, vector<24x256xf32>
    %c0_1 = arith.constant 0 : index
    %c0_2 = arith.constant 0 : index
    %1 = vector.load %arg1[%c0_1, %c0_2] : memref<256x256xf32, #tpu.memory_space<vmem>>, vector<256x256xf32>
    %cst = arith.constant dense<0.000000e+00> : vector<24x256xf32>
    %2 = tpu.matmul %0, %1, %cst {dimension_numbers = #tpu.dot_dimension_numbers<[1], [0], [0], [1], [0, 0, 1, 1], [], []>} : vector<24x256xf32>, vector<256x256xf32>, vector<24x256xf32> -> vector<24x256xf32>
    %cst_3 = arith.constant 0.000000e+00 : f32
    %3 = vector.broadcast %cst_3 : f32 to vector<24x256xf32>
    %4 = arith.maximumf %2, %3 : vector<24x256xf32>
    %c0_4 = arith.constant 0 : index
    %c0_5 = arith.constant 0 : index
    %5 = vector.load %arg2[%c0_4, %c0_5] : memref<256x128xf32, #tpu.memory_space<vmem>>, vector<256x128xf32>
    %cst_6 = arith.constant dense<0.000000e+00> : vector<24x128xf32>
    %6 = tpu.matmul %4, %5, %cst_6 {dimension_numbers = #tpu.dot_dimension_numbers<[1], [0], [0], [1], [0, 0, 1, 1], [], []>} : vector<24x256xf32>, vector<256x128xf32>, vector<24x128xf32> -> vector<24x128xf32>
    %cst_7 = arith.constant 0.000000e+00 : f32
    %7 = vector.broadcast %cst_7 : f32 to vector<24x128xf32>
    %8 = arith.maximumf %6, %7 : vector<24x128xf32>
    %c0_8 = arith.constant 0 : index
    %c0_9 = arith.constant 0 : index
    %9 = vector.load %arg4[%c0_8, %c0_9] : memref<24x128xf32, #tpu.memory_space<vmem>>, vector<24x128xf32>
    tpu.vector_store %arg4[%c0_8, %c0_9], %8 {strides = array<i32>} : memref<24x128xf32, #tpu.memory_space<vmem>>, vector<24x128xf32>,
    return
  }
  func.func @transform_0(%arg0: i32) -> (i32, i32) {
    %c0_i32 = arith.constant 0 : i32
    %c0_i32_0 = arith.constant 0 : i32
    %c0_i32_1 = arith.constant 0 : i32
    return %c0_i32, %c0_i32_0 : i32, i32
  }
  func.func @transform_1(%arg0: i32) -> (i32, i32) {
    %c0_i32 = arith.constant 0 : i32
    %c0_i32_0 = arith.constant 0 : i32
    %c0_i32_1 = arith.constant 0 : i32
    return %c0_i32, %c0_i32_0 : i32, i32
  }
  func.func @transform_2(%arg0: i32) -> (i32, i32) {
    %c0_i32 = arith.constant 0 : i32
    %c0_i32_0 = arith.constant 0 : i32
    return %arg0, %c0_i32 : i32, i32
  }
  func.func @transform_3(%arg0: i32) -> (i32, i32) {
    %c0_i32 = arith.constant 0 : i32
    %c0_i32_0 = arith.constant 0 : i32
    return %arg0, %c0_i32 : i32, i32
  }
}

</mosaic_0001>

<bundles_post_ra>
// kernel: tpu_custom_call.1
= control target key start
LH: loop header
LB: loop body
LE: loop exit
PB: predicated region body
PF: predicated region fallthrough
CT: control target
= control target key end

     0   :  { %8 = vsyncpa [#allocation3], 0  ;;  %s1268_s0 = inlined_call_operand.hbm [shape: f32[256,256], index: 0, kind: input, shape index: {}]   ;;  %s1269_s1 = inlined_call_operand.hbm [shape: f32[256,128], index: 1, kind: input, shape index: {}]   ;;  %s1270_s2 = inlined_call_operand.hbm [shape: f32[65,256], index: 2, kind: input, shape index: {}]   ;;  %s1271_s3 = inlined_call_operand.hbm [shape: f32[65,128], index: 3, kind: output, shape index: {}]  }
   0x1   :  { %9 = vsyncpa [#allocation6], 0 }
   0x2   :  { %10 = vsyncpa [#allocation4], 0 }
   0x3   :  { %12 = vsyncpa [#allocation4 + $0x1], 0  ;;  %s1024_s12 = smov 0   ;;  %s1026_s13 = smov 0  }
   0x4   :  { %s1028_s14 = smov 0   ;;  %s1030_s15 = smov 0  }
   0x5 LB: > { %s1045_s16 = sadd.s32 4294967295, %s992_s15   ;;  %s602_s17 = sadd.s32 4294967294, %s992_s15   ;;  %s992_s15 = sphi %s1030_s15, %s1302_s15   ;;  %s988_s14 = sphi %s1028_s14, %s1301_s14   ;;  %s984_s13 = sphi %s1026_s13, %s1300_s13   ;;  %s980_s12 = sphi %s1024_s12, %s1299_s12  }
   0x6   : > { %s1049_s18 = sadd.s32 1, %s992_s15   ;;  %s67_s19 = sadd.s32 1, %s988_s14 }
   0x7   : > { %s64_s20 = ssub.s32 %s992_s15, %s1049_s18  ;;  %p74_p0 = scmp.ne.s32.totalorder %s988_s14, %s984_s13 }
   0x8   : > { %p65_p1 = scmp.eq.s32.totalorder %s64_s20, 0  ;;  %p75_p2 = scmp.eq.s32.totalorder %s992_s15, 0 }
   0x9   : > { %p80_p3 = scmp.ne.s32.totalorder %s984_s13, %s980_s12  ;;  %p1272_p4 = scmp.eq.s32.totalorder %s1045_s16, 0 }
   0xa   : > { %s1061_s21 = scalar_select %p65_p1, %s988_s14, %s67_s19  }
   0xb   : > { %p1063_p5 = por %p75_p2, %p74_p0  ;;  %p1069_p6 = por %p1272_p4, %p80_p3 }
   0xc   : > { %p104_p7 = scmp.eq.s32.totalorder %s1045_s16, 2  ;;  %p110_p8 = scmp.eq.s32.totalorder %s602_s17, 2 }
   0xd   : > { %s1279_s22 = scalar_select %p1063_p5, 1, 0 }
   0xe   : > { %s1280_s23 = scalar_select %p1069_p6, 1, 0 }
   0xf   : > { %p603_p9 = scmp.ge.s32.totalorder %s992_s15, 1  ;;  %p117_p10 = scmp.lt.s32.totalorder %s992_s15, 4 }
  0x10   : > { %p1076_p11 = por %p104_p7, %p74_p0  ;;  %p1080_p12 = por %p110_p8, %p80_p3 }
  0x11   : > { %p1084_p13 = pnand %p603_p9, %p117_p10  ;;  %s994_s27 = smov [#allocation2]  }
  0x12   : > { %s1281_s24 = scalar_select %p1076_p11, 1, 0 }
  0x13   : > { %s1282_s25 = scalar_select %p1080_p12, 1, 0 }
  0x14   : > { %s1283_s26 = scalar_select %p1084_p13, 1, 0 }
  0x15   : > { %p771_p1 = pneg %p1084_p13  ;;  %s129_s28 = sshll.u32 %s994_s27, 4  ;;  %s130_s28 = int_to_ptr.vmem [resolvable:$true] %s129_s28 }
  0x16   : > { %s995_s30 = smov [#allocation5]   ;;  %s832_s7 = scalar_lea.hbm %s1268_s0, 8192 }
  0x17   : > { %p1092_p2 = pnand %p771_p1, %p1272_p4  ;;  %s142_s4 = sshll.u32 %s995_s30, 4  ;;  %s143_s4 = int_to_ptr.vmem [resolvable:$true] %s142_s4 }
  0x18   : > { %p833_p3 = scmp.ne.s32.totalorder %s1268_s0, %s832_s7  ;;  %p839_p10 = scmp.lt.u32.totalorder %s832_s7, %s1268_s0 }
  0x19   : > { %p834_p7 = pneg %p1092_p2 }
  0x1b   : > { %p835_p8 = pnand %p834_p7, %p833_p3 }
  0x1d   : > { %p836_p9 = pneg %p835_p8 }
  0x1f   : > { %p841_p1 = pnand %p839_p10, %p836_p9 }
  0x21   : > { %844 = shalt.err (!%p841_p1)
}
  0x22   : > { %s845_s17 = scalar_lea.vmem %s130_s28, 8192  ;;  %p853_p11 = scmp.lt.s32.totalorder %s130_s28, %s130_s28 }
  0x23   : > { %p846_p4 = scmp.ne.s32.totalorder %s130_s28, %s845_s17  ;;  %p854_p6 = scmp.lt.s32.totalorder %s845_s17, %s845_s17 }
  0x25   : > { %p848_p0 = pnand %p846_p4, %p834_p7  ;;  %p855_p13 = por %p854_p6, %p853_p11 }
  0x27   : > { %p849_p12 = pneg %p848_p0 }
  0x29   : > { %p856_p5 = pnand %p855_p13, %p849_p12 }
  0x2b   : > { %859 = shalt.err (!%p856_p5)
}
  0x2c   : > { %s1277_s19 = smov 256   ;;  %s1278_s20 = smov 16  }
  0x2d   : > { %774 = dma.hbm_to_vmem [thread:$0]  (!%p1092_p2), %s1268_s0, 8192, %s130_s28, [#allocation3], %s1277_s19, %s1277_s19, %s1278_s20  }
  0x2e   : > { %p1285_p4 = scmp.ne.s32.totalorder %s1279_s22, 0  ;;  %p1286_p0 = scmp.lt.s32.totalorder %s992_s15, 3 }
  0x2f   : > { %s860_s8 = scalar_lea.hbm %s1269_s1, 4096 }
  0x30   : > { %p1126_p3 = pnand %p1286_p0, %p1285_p4  ;;  %p861_p5 = scmp.ne.s32.totalorder %s1269_s1, %s860_s8 }
  0x31   : > { %p867_p12 = scmp.lt.u32.totalorder %s860_s8, %s1269_s1 }
  0x32   : > { %s1287_s5 = scalar_select %p1126_p3, 1, 0 }
  0x33   : > { %p863_p6 = pnand %p861_p5, %p834_p7 }
  0x35   : > { %p864_p11 = pneg %p863_p6 }
  0x37   : > { %p869_p13 = pnand %p867_p12, %p864_p11 }
  0x39   : > { %872 = shalt.err (!%p869_p13)
}
  0x3a   : > { %s873_s11 = scalar_lea.vmem %s143_s4, 4096  ;;  %p881_p1 = scmp.lt.s32.totalorder %s143_s4, %s143_s4 }
  0x3b   : > { %p874_p8 = scmp.ne.s32.totalorder %s143_s4, %s873_s11  ;;  %p882_p4 = scmp.lt.s32.totalorder %s873_s11, %s873_s11 }
  0x3d   : > { %p876_p9 = pnand %p874_p8, %p834_p7  ;;  %p883_p0 = por %p882_p4, %p881_p1 }
  0x3f   : > { %p877_p10 = pneg %p876_p9 }
  0x41   : > { %p884_p3 = pnand %p883_p0, %p877_p10 }
  0x43   : > { %887 = shalt.err (!%p884_p3)
}
  0x44   : > { %s998_s17 = smov 128   ;;  %s999_s27 = smov 8  }
  0x45   : > { %777 = dma.hbm_to_vmem [thread:$0]  (!%p1092_p2), %s1269_s1, 4096, %s143_s4, [#allocation6], %s998_s17, %s998_s17, %s999_s27  }
  0x46   : > { %s156_s7 = sand.u32 1, %s992_s15   ;;  %s158_s8 = sand.u32 1, %s988_s14  }
  0x47   : > { %s756_s9 = smul.u32 48, %s158_s8  ;;  %s1160_s29 = scalar_lea.sflag [#allocation3], %s156_s7 }
  0x48   : > { %s618_s10 = smul.u32 768, %s992_s15  ;;  %p1288_p7 = scmp.ne.s32.totalorder %s1287_s5, 0 }
  0x49   : > { %s160_s19 = scalar_lea.vmem [#allocation7], %s756_s9  ;;  %s893_s30 = scalar_lea.hbm %s1270_s2, 2304 }
  0x4a   : > { %s1156_s11 = scalar_lea.hbm %s1270_s2, %s618_s10  ;;  %s168_s20 = sshll.u32 %s160_s19, 4  ;;  %s1158_s20 = int_to_ptr.vmem [resolvable:$true] %s168_s20 }
  0x4b   : > { %s888_s4 = scalar_lea.hbm %s1156_s11, 768  ;;  %p890_p3 = pneg %p1288_p7 }
  0x4c   : > { %p889_p2 = scmp.ne.s32.totalorder %s1156_s11, %s888_s4  ;;  %p894_p11 = scmp.lt.u32.totalorder %s1156_s11, %s1270_s2 }
  0x4d   : > { %p895_p12 = scmp.lt.u32.totalorder %s893_s30, %s888_s4  ;;  %p897_p8 = scmp.lt.u32.totalorder %s888_s4, %s1156_s11 }
  0x4e   : > { %p891_p5 = pnand %p890_p3, %p889_p2 }
  0x4f   : > { %p896_p13 = por %p895_p12, %p894_p11 }
  0x50   : > { %p892_p6 = pneg %p891_p5 }
  0x51   : > { %p898_p9 = por %p897_p8, %p896_p13 }
  0x53   : > { %p899_p10 = pnand %p898_p9, %p892_p6 }
  0x55   : > { %902 = shalt.err (!%p899_p10)
}
  0x56   : > { %s903_s19 = scalar_lea.vmem %s1158_s20, 768  ;;  %s1000_s7 = smov [#allocation7]  }
  0x57   : > { %p904_p1 = scmp.ne.s32.totalorder %s1158_s20, %s903_s19  ;;  %s908_s9 = sshll.u32 %s1000_s7, 4  ;;  %s909_s9 = int_to_ptr.vmem [resolvable:$false] %s908_s9 }
  0x58   : > { %s910_s10 = scalar_lea.vmem %s909_s9, 1536  ;;  %p911_p2 = scmp.lt.s32.totalorder %s1158_s20, %s909_s9 }
  0x59   : > { %p906_p4 = pnand %p904_p1, %p890_p3  ;;  %p912_p5 = scmp.lt.s32.totalorder %s910_s10, %s903_s19 }
  0x5b   : > { %p907_p0 = pneg %p906_p4  ;;  %p913_p11 = por %p912_p5, %p911_p2 }
  0x5d   : > { %p914_p12 = pnand %p913_p11, %p907_p0 }
  0x5f   : > { %917 = shalt.err (!%p914_p12)
}
  0x60   : > { %s1289_s28 = smov 16   ;;  %s1290_s22 = smov 256  }
  0x61   : > { %781 = dma.hbm_to_vmem [thread:$0]  (!%p1288_p7), %s1156_s11, 768, %s1158_s20, %s1160_s29, %s1290_s22, %s1290_s22, %s1289_s28  }
  0x62   : > { %p1291_p3 = scmp.ne.s32.totalorder %s1283_s26, 0 }
  0x63   : > { %p1292_p6 = scmp.eq.s32.totalorder (!%p1291_p3), %s1045_s16, 0 }
  0x64   : > { %180 = sbr.rel (%p1291_p3) target bundleno = 639 (0x27f), region = 32 }
  0x6b   : > { %963 = dma.done.wait (%p1292_p6), [#allocation3], 8192   ;;  %p1293_p13 = pmov %p1292_p6 }
  0x6c   : > { %p1294_p8 = pmov %p1292_p6 }
  0x6d   : > { %965 = vsyncadd (%p1293_p13), [#allocation3], 4294959104 }
  0x6e   : > { %967 = dma.done.wait (%p1294_p8), [#allocation6], 4096   ;;  %p1295_p9 = pmov %p1292_p6 }
  0x6f   : > { %s190_s5 = sand.u32 1, %s1045_s16   ;;  %s1203_s20 = sand.u32 1, %s984_s13  }
  0x70   : > { %969 = vsyncadd (%p1295_p9), [#allocation6], 4294963200  ;;  %s757_s26 = smul.u32 48, %s1203_s20  ;;  %s191_s11 = scalar_lea.sflag [#allocation3], %s190_s5 }
  0x71   : > { %p1296_p7 = scmp.ne.s32.totalorder %s1280_s23, 0 }
  0x72   : > { %s1206_s29 = scalar_lea.vmem [#allocation7], %s757_s26 }
  0x73   : > { %971 = dma.done.wait (%p1296_p7), %s191_s11, 768  }
  0x74   : > { %973 = vsyncadd (%p1296_p7), %s191_s11, 4294966528  ;;  %v226_v0 = vld [vmem:[#allocation2 + $0x8] sm:$0xff]  ;;  %v228_v1 = vld [vmem:[#allocation2 + $0x18] sm:$0xff]  ;;  %s758_s23 = smul.u32 24, %s1203_s20  ;;  %s497_s19 = scalar_lea.sflag [#allocation4], %s1203_s20 }
  0x75   : > { %v225_v2 = vld [vmem:[#allocation2] sm:$0xff]  ;;  %v660_v3 = vpack.c.bf16 %v228_v1, %v226_v0  ;;  %v227_v4 = vld [vmem:[#allocation2 + $0x10] sm:$0xff]  ;;  %v230_v5 = vld [vmem:[#allocation2 + $0x28] sm:$0xff]  ;;  %s617_s27 = smul.u32 384, %s1045_s16  ;;  %p1297_p1 = scmp.ne.s32.totalorder %s1281_s24, 0 }
  0x76   : > { %v232_v6 = vld [vmem:[#allocation2 + $0x38] sm:$0xff]  ;;  %v662_v7 = vpack.c.bf16 %v227_v4, %v225_v2  ;;  %v229_v9 = vld [vmem:[#allocation2 + $0x20] sm:$0xff]  ;;  %v231_v10 = vld [vmem:[#allocation2 + $0x30] sm:$0xff]  ;;  %s216_s4 = scalar_lea.vmem [#allocation8], %s758_s23  ;;  %s1001_s16 = smov [#allocation8]  }
  0x77   : > { %v664_v8 = vpack.c.bf16 %v232_v6, %v230_v5  ;;  %v234_v11 = vld [vmem:[#allocation2 + $0x48] sm:$0xff]  ;;  %661 = vmatprep.subr.bf16.mxu0 %v660_v3  ;;  %v236_v12 = vld [vmem:[#allocation2 + $0x58] sm:$0xff]  ;;  %v666_v13 = vpack.c.bf16 %v231_v10, %v229_v9  ;;  %v233_v15 = vld [vmem:[#allocation2 + $0x40] sm:$0xff]  ;;  %s510_s17 = sshll.u32 %s216_s4, 4  ;;  %s1225_s8 = scalar_lea.hbm %s1271_s3, %s617_s27  ;;  %s1220_s17 = int_to_ptr.vmem [resolvable:$true] %s510_s17 }
  0x78   : > { %663 = vmatpush1.bf16.msra.mxu0 %v662_v7  ;;  %v668_v14 = vpack.c.bf16 %v236_v12, %v234_v11  ;;  %v235_v16 = vld [vmem:[#allocation2 + $0x50] sm:$0xff]  ;;  %v238_v17 = vld [vmem:[#allocation2 + $0x68] sm:$0xff]  ;;  %v240_v18 = vld [vmem:[#allocation2 + $0x78] sm:$0xff]  ;;  %s918_s7 = scalar_lea.vmem %s1220_s17, 384  ;;  %s922_s9 = sshll.u32 %s1001_s16, 4  ;;  %s923_s9 = int_to_ptr.vmem [resolvable:$false] %s922_s9 }
  0x79   : > { %665 = vmatprep.subr.bf16.mxu0 %v664_v8  ;;  %v670_v19 = vpack.c.bf16 %v235_v16, %v233_v15  ;;  %v672_v20 = vpack.c.bf16 %v240_v18, %v238_v17  ;;  %v237_v21 = vld [vmem:[#allocation2 + $0x60] sm:$0xff]  ;;  %v239_v22 = vld [vmem:[#allocation2 + $0x70] sm:$0xff]  ;;  %v242_v23 = vld [vmem:[#allocation2 + $0x88] sm:$0xff]  ;;  %p919_p10 = scmp.ne.s32.totalorder %s1220_s17, %s918_s7  ;;  %s924_s10 = scalar_lea.vmem %s923_s9, 768 }
  0x7a   : > { %v244_v24 = vld [vmem:[#allocation2 + $0x98] sm:$0xff]  ;;  %v674_v25 = vpack.c.bf16 %v239_v22, %v237_v21  ;;  %v241_v27 = vld [vmem:[#allocation2 + $0x80] sm:$0xff]  ;;  %v243_v28 = vld [vmem:[#allocation2 + $0x90] sm:$0xff]  ;;  %p925_p2 = scmp.lt.s32.totalorder %s1220_s17, %s923_s9  ;;  %p926_p5 = scmp.lt.s32.totalorder %s924_s10, %s918_s7 }
  0x7b   : > { %v676_v26 = vpack.c.bf16 %v244_v24, %v242_v23  ;;  %v246_v29 = vld [vmem:[#allocation2 + $0xa8] sm:$0xff]  ;;  %v248_v30 = vld [vmem:[#allocation2 + $0xb8] sm:$0xff]  ;;  %v678_v31 = vpack.c.bf16 %v243_v28, %v241_v27  ;;  %v245_v33 = vld [vmem:[#allocation2 + $0xa0] sm:$0xff]  ;;  %p920_p4 = pnand %p919_p10, %p1297_p1 }
  0x7c   : > { %667 = vmatpush1.bf16.msra.mxu0 %v666_v13  ;;  %v680_v32 = vpack.c.bf16 %v248_v30, %v246_v29  ;;  %v247_v34 = vld [vmem:[#allocation2 + $0xb0] sm:$0xff]  ;;  %v250_v35 = vld [vmem:[#allocation2 + $0xc8] sm:$0xff]  ;;  %v252_v36 = vld [vmem:[#allocation2 + $0xd8] sm:$0xff]  ;;  %p927_p11 = por %p926_p5, %p925_p2 }
  0x7d   : > { %669 = vmatprep.subr.bf16.mxu0 %v668_v14  ;;  %v682_v37 = vpack.c.bf16 %v247_v34, %v245_v33  ;;  %v684_v38 = vpack.c.bf16 %v252_v36, %v250_v35  ;;  %v249_v39 = vld [vmem:[#allocation2 + $0xc0] sm:$0xff]  ;;  %v251_v40 = vld [vmem:[#allocation2 + $0xd0] sm:$0xff]  ;;  %v220_v41 = vld [vmem:[%s1206_s29 + $0x8] sm:$0xff]  ;;  %p921_p0 = pneg %p920_p4 }
  0x7e   : > { %v254_v42 = vld [vmem:[#allocation2 + $0xe8] sm:$0xff]  ;;  %v256_v43 = vld [vmem:[#allocation2 + $0xf8] sm:$0xff]  ;;  %353 = vmatprep.mubr.f32.mxu0 %v220_v41  ;;  %v253_v44 = vld [vmem:[#allocation2 + $0xe0] sm:$0xff]  ;;  %v686_v48 = vpack.c.bf16 %v251_v40, %v249_v39 }
  0x7f   : > { %v255_v45 = vld [vmem:[#allocation2 + $0xf0] sm:$0xff]  ;;  %v394_v46 = vld [vmem:[#allocation5 + $0x80] sm:$0xff]  ;;  %v395_v47 = vld [vmem:[#allocation5 + $0x88] sm:$0xff]  ;;  %v688_v54 = vpack.c.bf16 %v256_v43, %v254_v42  ;;  %p928_p12 = pnand %p927_p11, %p921_p0 }
  0x80   : > { %671 = vmatpush1.bf16.msra.mxu0 %v670_v19  ;;  %v258_v49 = vld [vmem:[#allocation2 + $0x108] sm:$0xff]  ;;  %v724_v50 = vpack.c.bf16 %v395_v47, %v394_v46  ;;  %v378_v51 = vld [vmem:[#allocation5] sm:$0xff]  ;;  %v396_v53 = vld [vmem:[#allocation5 + $0x90] sm:$0xff]  ;;  %v690_v0 = vpack.c.bf16 %v255_v45, %v253_v44 }
  0x81   : > { %673 = vmatprep.subr.bf16.mxu0 %v672_v20  ;;  %v379_v52 = vld [vmem:[#allocation5 + $0x8] sm:$0xff]  ;;  %v397_v56 = vld [vmem:[#allocation5 + $0x98] sm:$0xff]  ;;  %v380_v57 = vld [vmem:[#allocation5 + $0x10] sm:$0xff] }
  0x82   : > { %v726_v55 = vpack.c.bf16 %v379_v52, %v378_v51  ;;  %v381_v58 = vld [vmem:[#allocation5 + $0x18] sm:$0xff]  ;;  %725 = vmatprep.subr.bf16.mxu1 %v724_v50  ;;  %v728_v60 = vpack.c.bf16 %v397_v56, %v396_v53  ;;  %v398_v61 = vld [vmem:[#allocation5 + $0xa0] sm:$0xff]  ;;  %v399_v62 = vld [vmem:[#allocation5 + $0xa8] sm:$0xff] }
  0x83   : > { %v260_v59 = vld [vmem:[#allocation2 + $0x118] sm:$0xff]  ;;  %v730_v63 = vpack.c.bf16 %v381_v58, %v380_v57  ;;  %v257_v1 = vld [vmem:[#allocation2 + $0x100] sm:$0xff]  ;;  %v732_v2 = vpack.c.bf16 %v399_v62, %v398_v61  ;;  %v383_v4 = vld [vmem:[#allocation5 + $0x28] sm:$0xff] }
  0x84   : > { %675 = vmatpush1.bf16.msra.mxu0 %v674_v25  ;;  %727 = vmatpush3.bf16.msra.mxu1 %v726_v55  ;;  %v382_v3 = vld [vmem:[#allocation5 + $0x20] sm:$0xff]  ;;  %v692_v5 = vpack.c.bf16 %v260_v59, %v258_v49  ;;  %v259_v6 = vld [vmem:[#allocation2 + $0x110] sm:$0xff]  ;;  %v401_v8 = vld [vmem:[#allocation5 + $0xb8] sm:$0xff] }
  0x85   : > { %677 = vmatprep.subr.bf16.mxu0 %v676_v26  ;;  %729 = vmatprep.subr.bf16.mxu1 %v728_v60  ;;  %v400_v7 = vld [vmem:[#allocation5 + $0xb0] sm:$0xff]  ;;  %v262_v9 = vld [vmem:[#allocation2 + $0x128] sm:$0xff]  ;;  %v264_v10 = vld [vmem:[#allocation2 + $0x138] sm:$0xff]  ;;  %v734_v11 = vpack.c.bf16 %v383_v4, %v382_v3  ;;  %v694_v12 = vpack.c.bf16 %v259_v6, %v257_v1 }
  0x86   : > { %v261_v13 = vld [vmem:[#allocation2 + $0x120] sm:$0xff]  ;;  %v736_v14 = vpack.c.bf16 %v401_v8, %v400_v7  ;;  %v384_v15 = vld [vmem:[#allocation5 + $0x30] sm:$0xff]  ;;  %v385_v16 = vld [vmem:[#allocation5 + $0x38] sm:$0xff]  ;;  %v696_v17 = vpack.c.bf16 %v264_v10, %v262_v9 }
  0x87   : > { %v263_v18 = vld [vmem:[#allocation2 + $0x130] sm:$0xff]  ;;  %v402_v19 = vld [vmem:[#allocation5 + $0xc0] sm:$0xff]  ;;  %v403_v20 = vld [vmem:[#allocation5 + $0xc8] sm:$0xff]  ;;  %v738_v23 = vpack.c.bf16 %v385_v16, %v384_v15 }
  0x88   : > { %679 = vmatpush1.bf16.msra.mxu0 %v678_v31  ;;  %731 = vmatpush3.bf16.msra.mxu1 %v730_v63  ;;  %v266_v21 = vld [vmem:[#allocation2 + $0x148] sm:$0xff]  ;;  %v268_v22 = vld [vmem:[#allocation2 + $0x158] sm:$0xff]  ;;  %v698_v24 = vpack.c.bf16 %v263_v18, %v261_v13  ;;  %v265_v25 = vld [vmem:[#allocation2 + $0x140] sm:$0xff]  ;;  %v740_v26 = vpack.c.bf16 %v403_v20, %v402_v19 }
  0x89   : > { %681 = vmatprep.subr.bf16.mxu0 %v680_v32  ;;  %733 = vmatprep.subr.bf16.mxu1 %v732_v2  ;;  %v386_v27 = vld [vmem:[#allocation5 + $0x40] sm:$0xff]  ;;  %v387_v28 = vld [vmem:[#allocation5 + $0x48] sm:$0xff]  ;;  %v700_v29 = vpack.c.bf16 %v268_v22, %v266_v21  ;;  %v267_v30 = vld [vmem:[#allocation2 + $0x150] sm:$0xff] }
  0x8a   : > { %v404_v31 = vld [vmem:[#allocation5 + $0xd0] sm:$0xff]  ;;  %v405_v32 = vld [vmem:[#allocation5 + $0xd8] sm:$0xff]  ;;  %v270_v33 = vld [vmem:[#allocation2 + $0x168] sm:$0xff]  ;;  %v742_v35 = vpack.c.bf16 %v387_v28, %v386_v27  ;;  %v702_v36 = vpack.c.bf16 %v267_v30, %v265_v25 }
  0x8b   : > { %v272_v34 = vld [vmem:[#allocation2 + $0x178] sm:$0xff]  ;;  %v388_v39 = vld [vmem:[#allocation5 + $0x50] sm:$0xff]  ;;  %v406_v43 = vld [vmem:[#allocation5 + $0xe0] sm:$0xff] }
  0x8c   : > { %683 = vmatpush1.bf16.msra.mxu0 %v682_v37  ;;  %735 = vmatpush3.bf16.msra.mxu1 %v734_v11  ;;  %v269_v37 = vld [vmem:[#allocation2 + $0x160] sm:$0xff]  ;;  %v389_v40 = vld [vmem:[#allocation5 + $0x58] sm:$0xff]  ;;  %v704_v41 = vpack.c.bf16 %v272_v34, %v270_v33  ;;  %v271_v42 = vld [vmem:[#allocation2 + $0x170] sm:$0xff] }
  0x8d   : > { %685 = vmatprep.subr.bf16.mxu0 %v684_v38  ;;  %737 = vmatprep.subr.bf16.mxu1 %v736_v14  ;;  %v744_v38 = vpack.c.bf16 %v405_v32, %v404_v31  ;;  %v407_v44 = vld [vmem:[#allocation5 + $0xe8] sm:$0xff]  ;;  %v276_v46 = vld [vmem:[#allocation2 + $0x198] sm:$0xff]  ;;  %v746_v47 = vpack.c.bf16 %v389_v40, %v388_v39  ;;  %v390_v50 = vld [vmem:[#allocation5 + $0x60] sm:$0xff] }
  0x8e   : > { %v274_v45 = vld [vmem:[#allocation2 + $0x188] sm:$0xff]  ;;  %v748_v49 = vpack.c.bf16 %v407_v44, %v406_v43  ;;  %v273_v53 = vld [vmem:[#allocation2 + $0x180] sm:$0xff]  ;;  %v280_v56 = vld [vmem:[#allocation2 + $0x1b8] sm:$0xff] }
  0x8f   : > { %v391_v51 = vld [vmem:[#allocation5 + $0x68] sm:$0xff]  ;;  %v708_v52 = vpack.c.bf16 %v276_v46, %v274_v45  ;;  %v277_v60 = vld [vmem:[#allocation2 + $0x1a0] sm:$0xff]  ;;  %v279_v61 = vld [vmem:[#allocation2 + $0x1b0] sm:$0xff] }
  0x90   : > { %687 = vmatpush1.bf16.msra.mxu0 %v686_v48  ;;  %739 = vmatpush3.bf16.msra.mxu1 %v738_v23  ;;  %v706_v48 = vpack.c.bf16 %v271_v42, %v269_v37  ;;  %v278_v55 = vld [vmem:[#allocation2 + $0x1a8] sm:$0xff]  ;;  %v750_v57 = vpack.c.bf16 %v391_v51, %v390_v50  ;;  %v284_v63 = vld [vmem:[#allocation2 + $0x1d8] sm:$0xff]  ;;  %v281_v2 = vld [vmem:[#allocation2 + $0x1c0] sm:$0xff] }
  0x91   : > { %689 = vmatprep.subr.bf16.mxu0 %v688_v54  ;;  %741 = vmatprep.subr.bf16.mxu1 %v740_v26  ;;  %v275_v54 = vld [vmem:[#allocation2 + $0x190] sm:$0xff]  ;;  %v712_v59 = vpack.c.bf16 %v280_v56, %v278_v55  ;;  %v282_v62 = vld [vmem:[#allocation2 + $0x1c8] sm:$0xff]  ;;  %v285_v8 = vld [vmem:[#allocation2 + $0x1e0] sm:$0xff] }
  0x92   : > { %v710_v58 = vpack.c.bf16 %v275_v54, %v273_v53  ;;  %v716_v1 = vpack.c.bf16 %v284_v63, %v282_v62  ;;  %v283_v3 = vld [vmem:[#allocation2 + $0x1d0] sm:$0xff]  ;;  %v286_v4 = vld [vmem:[#allocation2 + $0x1e8] sm:$0xff]  ;;  %v393_v20 = vld [vmem:[#allocation5 + $0x78] sm:$0xff] }
  0x93   : > { %v718_v6 = vpack.c.bf16 %v283_v3, %v281_v2  ;;  %v287_v9 = vld [vmem:[#allocation2 + $0x1f0] sm:$0xff]  ;;  %v224_v14 = vld [vmem:[%s1206_s29 + $0x28] sm:$0xff] }
  0x94   : > { %691 = vmatpush1.bf16.msra.mxu0 %v690_v0  ;;  %743 = vmatpush3.bf16.msra.mxu1 %v742_v35  ;;  %v714_v0 = vpack.c.bf16 %v279_v61, %v277_v60  ;;  %v722_v10 = vpack.c.bf16 %v287_v9, %v285_v8  ;;  %v219_v11 = vld [vmem:[%s1206_s29] sm:$0xff]  ;;  %v221_v13 = vld [vmem:[%s1206_s29 + $0x10] sm:$0xff] }
  0x95   : > { %693 = vmatprep.subr.bf16.mxu0 %v692_v5  ;;  %745 = vmatprep.subr.bf16.mxu1 %v744_v38  ;;  %v288_v5 = vld [vmem:[#allocation2 + $0x1f8] sm:$0xff]  ;;  %v223_v15 = vld [vmem:[%s1206_s29 + $0x20] sm:$0xff] }
  0x96   : > { %v720_v7 = vpack.c.bf16 %v288_v5, %v286_v4  ;;  %v408_v16 = vld [vmem:[#allocation5 + $0xf0] sm:$0xff] }
  0x97   : > { %v392_v19 = vld [vmem:[#allocation5 + $0x70] sm:$0xff] }
  0x98   : > { %695 = vmatpush1.bf16.msra.mxu0 %v694_v12  ;;  %747 = vmatpush3.bf16.msra.mxu1 %v746_v47  ;;  %v222_v12 = vld [vmem:[%s1206_s29 + $0x18] sm:$0xff]  ;;  %v754_v21 = vpack.c.bf16 %v393_v20, %v392_v19 }
  0x99   : > { %697 = vmatprep.subr.bf16.mxu0 %v696_v17  ;;  %749 = vmatprep.subr.bf16.mxu1 %v748_v49  ;;  %v409_v17 = vld [vmem:[#allocation5 + $0xf8] sm:$0xff] }
  0x9a   : > { %v752_v18 = vpack.c.bf16 %v409_v17, %v408_v16 }
  0x9c   : > { %699 = vmatpush1.bf16.msra.mxu0 %v698_v24  ;;  %751 = vmatpush3.bf16.msra.mxu1 %v750_v57 }
  0x9d   : > { %701 = vmatprep.subr.bf16.mxu0 %v700_v29  ;;  %753 = vmatprep.subr.bf16.mxu1 %v752_v18 }
  0xa0   : > { %703 = vmatpush1.bf16.msra.mxu0 %v702_v36  ;;  %755 = vmatpush3.bf16.msra.mxu1 %v754_v21 }
  0xa1   : > { %705 = vmatprep.subr.bf16.mxu0 %v704_v41 }
  0xa4   : > { %707 = vmatpush1.bf16.msra.mxu0 %v706_v48 }
  0xa5   : > { %709 = vmatprep.subr.bf16.mxu0 %v708_v52 }
  0xa8   : > { %711 = vmatpush1.bf16.msra.mxu0 %v710_v58 }
  0xa9   : > { %713 = vmatprep.subr.bf16.mxu0 %v712_v59 }
  0xac   : > { %715 = vmatpush1.bf16.msra.mxu0 %v714_v0 }
  0xad   : > { %717 = vmatprep.subr.bf16.mxu0 %v716_v1 }
  0xb0   : > { %719 = vmatpush1.bf16.msra.mxu0 %v718_v6 }
  0xb1   : > { %721 = vmatprep.subr.bf16.mxu0 %v720_v7 }
  0xb4   : > { %723 = vmatpush1.bf16.msra.mxu0 %v722_v10 }
  0xb7   : > { %354 = vmatmul.mubr.f32.vlgmr.msra.gmra.mrb[0].mxu0 %v219_v11 }
  0xb8   : > { %359 = vmatprep.mubr.f32.mxu0 %v222_v12 }
  0xbb   : > { %360 = vmatmul.mubr.f32.gmra.mrb[2].mxu0 %v221_v13 }
  0xbc   : > { %365 = vmatprep.mubr.f32.mxu0 %v224_v14 }
  0xbf   : > { %366 = vmatmul.mubr.f32.gmra.mrb[4].mxu0 %v223_v15 }
 0x18a   : > { %v355_v22 = vpop.f32.mrb[0].mxu0 }
 0x18b   : > { %v357_v23 = vpop.f32.mrb[1].mxu0  ;;  %v372_v25 = vmax.f32 %v355_v22, 0.0 }
 0x18c   : > { %v373_v24 = vmax.f32 %v357_v23, 0.0 }
 0x18e   : > { %v361_v26 = vpop.f32.mrb[2].mxu0  ;;  %474 = vmatprep.mubr.f32.mxu1 %v373_v24 }
 0x18f   : > { %v363_v27 = vpop.f32.mrb[3].mxu0  ;;  %475 = vmatmul.mubr.f32.vlgmr.msra.gmra.mrb[0].mxu1 %v372_v25  ;;  %v374_v29 = vmax.f32 %v361_v26, 0.0 }
 0x190   : > { %v375_v28 = vmax.f32 %v363_v27, 0.0 }
 0x192   : > { %v367_v30 = vpop.f32.mrb[4].mxu0  ;;  %479 = vmatprep.mubr.f32.mxu1 %v375_v28 }
 0x193   : > { %v369_v31 = vpop.f32.mrb[5].mxu0  ;;  %480 = vmatmul.mubr.f32.gmra.mrb[2].mxu1 %v374_v29  ;;  %v376_v33 = vmax.f32 %v367_v30, 0.0 }
 0x194   : > { %v377_v32 = vmax.f32 %v369_v31, 0.0 }
 0x196   : > { %484 = vmatprep.mubr.f32.mxu1 %v377_v32 }
 0x197   : > { %485 = vmatmul.mubr.f32.gmra.mrb[4].mxu1 %v376_v33 }
 0x262   : > { %v651_v34 = vpop.f32.mrb[0].mxu1 }
 0x263   : > { %v652_v35 = vpop.f32.mrb[1].mxu1 }
 0x264   : > { %v653_v36 = vadd.f32 %v652_v35, %v651_v34 }
 0x266   : > { %v490_v37 = vmax.f32 %v653_v36, 0.0  ;;  %v654_v38 = vpop.f32.mrb[2].mxu1 }
 0x267   : > { %v655_v39 = vpop.f32.mrb[3].mxu1 }
 0x268   : > { %493 = vst [vmem:[%s216_s4] sm:$0xff] %v490_v37  ;;  %v656_v40 = vadd.f32 %v655_v39, %v654_v38 }
 0x26a   : > { %v491_v41 = vmax.f32 %v656_v40, 0.0  ;;  %v657_v42 = vpop.f32.mrb[4].mxu1 }
 0x26b   : > { %v658_v43 = vpop.f32.mrb[5].mxu1 }
 0x26c   : > { %494 = vst [vmem:[%s216_s4 + $0x8] sm:$0xff] %v491_v41  ;;  %v659_v44 = vadd.f32 %v658_v43, %v657_v42 }
 0x26e   : > { %v492_v45 = vmax.f32 %v659_v44, 0.0 }
 0x270   : > { %495 = vst [vmem:[%s216_s4 + $0x10] sm:$0xff] %v492_v45 }
 0x271   : > { %931 = shalt.err (!%p928_p12)
}
 0x272   : > { %s932_s28 = scalar_lea.hbm %s1225_s8, 384  ;;  %s936_s26 = scalar_lea.hbm %s1271_s3, 1152 }
 0x273   : > { %p933_p3 = scmp.ne.s32.totalorder %s1225_s8, %s932_s28  ;;  %p937_p8 = scmp.lt.u32.totalorder %s1225_s8, %s1271_s3 }
 0x274   : > { %p938_p9 = scmp.lt.u32.totalorder %s936_s26, %s932_s28  ;;  %p940_p10 = scmp.lt.u32.totalorder %s932_s28, %s1225_s8 }
 0x275   : > { %p934_p6 = pnand %p933_p3, %p1297_p1 }
 0x276   : > { %p939_p7 = por %p938_p9, %p937_p8 }
 0x277   : > { %p935_p13 = pneg %p934_p6 }
 0x278   : > { %p941_p4 = por %p940_p10, %p939_p7 }
 0x27a   : > { %p942_p0 = pnand %p941_p4, %p935_p13 }
 0x27c   : > { %945 = shalt.err (!%p942_p0)
}
 0x27d   : > { %s1002_s23 = smov 128   ;;  %s1003_s4 = smov 8  }
 0x27e   : > { %769 = dma.vmem_to_hbm [thread:$0]  (%p1297_p1), %s1220_s17, 384, %s1225_s8, %s497_s19, %s1002_s23, %s1002_s23, %s1003_s4  }
 0x27f PF: > { %p791_p2 = scmp.ge.s32.totalorder %s992_s15, 2  ;;  %s525_s27 = sand.u32 1, %s980_s12  }
 0x280   : > { %p1298_p5 = scmp.ne.s32.totalorder %s1282_s25, 0  ;;  %s526_s30 = scalar_lea.sflag [#allocation4], %s525_s27 }
 0x282   : > { %p783_p11 = pnand %p791_p2, %p1298_p5 }
 0x284   : > { %975 = dma.done.wait (!%p783_p11), %s526_s30, 384  }
 0x285   : > { %977 = vsyncadd (!%p783_p11), %s526_s30, 4294966912  ;;  %p15_p12 = scmp.ge.s32.totalorder %s1049_s18, 5   ;;  %s1299_s12 = smov %s984_s13 }
 0x286   : > { %s1300_s13 = smov %s988_s14  ;;  %s1301_s14 = smov %s1061_s21 }
 0x287   : > { %s1302_s15 = smov %s1049_s18  ;;  %17 = sbr.rel (!%p15_p12) target bundleno = 5 (0x5), region = 84 }
 0x28e   :  { %531 = vsyncpa [#allocation3], 1 }
 0x28f   :  { %533 = vsyncpa [#allocation3 + $0x1], 1 }
 0x290   :  { %534 = vsyncpa [#allocation6], 1 }
 0x291   :  { %535 = vsyncpa [#allocation4], 1 }
 0x292   :  { %537 = vsyncpa [#allocation4 + $0x1], 1 }

</bundles_post_ra>
